<compile_context>
chip_gen: v7x
topology: tpu7x:2x2x1
jax: 0.10.0
libtpu: 0.0.40
codegen_flags: <defaults>
</compile_context>

<pallas_src>
import jax
import jax.numpy as jnp
from jax.experimental import pallas as pl
from jax.experimental.pallas import tpu as pltpu


def _round_up(x, m):
    return (x + m - 1) // m * m


def _pick_tm(m):
    # Largest M-tile (<=512) that divides M; per-grid-step overhead is ~0.35us,
    # so bigger tiles get much closer to the HBM roofline than 128-row tiles.
    for tm in (512, 256, 128, 64, 32, 16, 8):
        if m % tm == 0:
            return tm
    return 8


# ---------------------------------------------------------------------------
# Pallas kernel: fused  out = relu(P @ W + shift)
# (BatchNorm scale already folded into W; shift = beta - running_mean * scale)
# ---------------------------------------------------------------------------
def _fused_matmul_bn_relu_kernel(p_ref, w_ref, shift_ref, o_ref):
    acc = jnp.dot(p_ref[...], w_ref[...], preferred_element_type=jnp.float32)
    o_ref[...] = jnp.maximum(acc + shift_ref[...], 0.0)


def fused_phase_matmul_bn_relu(patches, weights, shift):
    """patches: [4, M, K] bf16, weights: [4, K, C] bf16, shift: [C] f32
       -> [4, M, C] f32 = relu(patches @ weights + shift) per phase."""
    P, M, K = patches.shape
    C = weights.shape[-1]

    tm = _pick_tm(M)
    m_pad = _round_up(M, tm)
    if m_pad != M:  # only for awkward spatial sizes; powers of two skip this copy
        patches = jnp.zeros((P, m_pad, K), patches.dtype).at[:, :M, :].set(patches)

    out = pl.pallas_call(
        _fused_matmul_bn_relu_kernel,
        out_shape=jax.ShapeDtypeStruct((P, m_pad, C), jnp.float32),
        grid_spec=pltpu.PrefetchScalarGridSpec(
            num_scalar_prefetch=0,
            grid=(P, m_pad // tm),
            in_specs=[
                pl.BlockSpec((None, tm, K), lambda ph, i: (ph, i, 0)),
                pl.BlockSpec((None, K, C), lambda ph, i: (ph, 0, 0)),
                pl.BlockSpec((1, C), lambda ph, i: (0, 0)),
            ],
            out_specs=pl.BlockSpec((None, tm, C), lambda ph, i: (ph, i, 0)),
        ),
        compiler_params=pltpu.CompilerParams(
            dimension_semantics=("parallel", "parallel")),
    )(patches, weights, shift.reshape(1, C))

    if m_pad != M:
        out = out[:, :M, :]
    return out


# ---------------------------------------------------------------------------
# ConvTranspose2d(4, stride=2, padding=1) -> 4 parity-phase matmuls.
# Output row oy = 2*py + dy gets contributions from input row iy = py + off
# with kernel tap ky, where the (off, ky) pairs are
#   dy == 0: (-1, 3), (0, 1)       dy == 1: (0, 2), (1, 0)
# (same along x).  Each phase therefore is a 2x2-tap conv => K = 4*Cin.
# ---------------------------------------------------------------------------
_PHASE_TAPS = {0: ((-1, 3), (0, 1)), 1: ((0, 2), (1, 0))}


def _build_phase_patches(x_nhwc):
    """x: [N, H, W, Cin] -> [4, N*H*W, 4*Cin] bf16 (phase order dy*2+dx)."""
    N, H, W, Cin = x_nhwc.shape
    xp = jnp.pad(x_nhwc, ((0, 0), (1, 1), (1, 1), (0, 0)))

    def shifted(oy, ox):
        return xp[:, 1 + oy:1 + oy + H, 1 + ox:1 + ox + W, :]

    phases = []
    for dy in (0, 1):
        for dx in (0, 1):
            taps = [shifted(oy, ox)
                    for oy, _ in _PHASE_TAPS[dy]
                    for ox, _ in _PHASE_TAPS[dx]]
            p = jnp.concatenate(taps, axis=-1)                 # [N, H, W, 4*Cin]
            phases.append(p.reshape(N * H * W, 4 * Cin))
    return jnp.stack(phases, axis=0).astype(jnp.bfloat16)


def _build_phase_weights(w, scale):
    """w: [Cin, Cout, 4, 4] (PyTorch ConvTranspose2d layout), scale: [Cout].
       -> [4, 4*Cin, Cout] bf16 with the BN scale folded in."""
    Cin, Cout = w.shape[0], w.shape[1]
    phases = []
    for dy in (0, 1):
        for dx in (0, 1):
            taps = [w[:, :, ky, kx]
                    for _, ky in _PHASE_TAPS[dy]
                    for _, kx in _PHASE_TAPS[dx]]              # 4 x [Cin, Cout]
            phases.append(jnp.stack(taps, axis=0).reshape(4 * Cin, Cout))
    wall = jnp.stack(phases, axis=0) * scale[None, None, :]
    return wall.astype(jnp.bfloat16)


# ---------------------------------------------------------------------------
# UpSampleBlock / Decoder forward (eval mode, NHWC internally)
# ---------------------------------------------------------------------------
def upsample_block_nhwc(x, params):
    N, H, W, _ = x.shape
    w = params["w"]
    Cout = w.shape[1]

    eps = 1e-5
    scale = params["gamma"] / jnp.sqrt(params["running_var"] + eps)
    shift = params["beta"] - params["running_mean"] * scale

    patches = _build_phase_patches(x)                          # [4, M, 4*Cin]
    weights = _build_phase_weights(w, scale)                   # [4, 4*Cin, Cout]
    out = fused_phase_matmul_bn_relu(patches, weights, shift)  # [4, M, Cout]

    # Interleave the 4 parity phases back into the [N, 2H, 2W, Cout] image.
    out = out.reshape(2, 2, N, H, W, Cout)
    out = out.transpose(2, 3, 0, 4, 1, 5).reshape(N, 2 * H, 2 * W, Cout)
    return out


@jax.jit
def decoder_forward(x, encoder_features, block_params):
    # NCHW at the public boundary (PyTorch convention), NHWC internally so the
    # channel axis stays lane-friendly and each block's concat is on the last
    # axis; one layout transpose at each end.
    x = jnp.transpose(x, (0, 2, 3, 1))
    for params, ftr in zip(block_params, encoder_features):
        x = upsample_block_nhwc(x, params)
        x = jnp.concatenate([x, jnp.transpose(ftr, (0, 2, 3, 1))], axis=-1)
    return jnp.transpose(x, (0, 3, 1, 2))


def init_decoder_params(key, chs, dropout):
    # dropout flags only affect train-mode behaviour (identity in eval mode).
    del dropout
    params = []
    for i in range(len(chs) - 1):
        in_ch = chs[0] if i == 0 else 2 * chs[i]
        out_ch = chs[i + 1]
        key, wk = jax.random.split(key)
        w = 0.02 * jax.random.normal(wk, (in_ch, out_ch, 4, 4), jnp.float32)
        params.append(dict(
            w=w,
            gamma=jnp.ones((out_ch,), jnp.float32),
            beta=jnp.zeros((out_ch,), jnp.float32),
            running_mean=jnp.zeros((out_ch,), jnp.float32),
            running_var=jnp.ones((out_ch,), jnp.float32),
        ))
    return params


# ---------------------------------------------------------------------------
# Pure-jnp f32 reference (independent dilated-conv formulation) — self check.
# ---------------------------------------------------------------------------
def _ref_conv_transpose(x_nhwc, w):
    N, H, W, Cin = x_nhwc.shape
    Cout = w.shape[1]
    d = jnp.zeros((N, 2 * H + 3, 2 * W + 3, Cin), jnp.float32)
    d = d.at[:, 2:2 + 2 * H:2, 2:2 + 2 * W:2, :].set(x_nhwc)
    wf = w[:, :, ::-1, ::-1]
    out = jnp.zeros((N, 2 * H, 2 * W, Cout), jnp.float32)
    for t in range(4):
        for s in range(4):
            out = out + jnp.einsum('nhwc,co->nhwo',
                                   d[:, t:t + 2 * H, s:s + 2 * W, :],
                                   wf[:, :, t, s])
    return out


def _ref_decoder(x, encoder_features, block_params):
    x = jnp.transpose(x, (0, 2, 3, 1))
    eps = 1e-5
    for params, ftr in zip(block_params, encoder_features):
        scale = params["gamma"] / jnp.sqrt(params["running_var"] + eps)
        shift = params["beta"] - params["running_mean"] * scale
        x = jnp.maximum(_ref_conv_transpose(x, params["w"]) * scale + shift, 0.0)
        x = jnp.concatenate([x, jnp.transpose(ftr, (0, 2, 3, 1))], axis=-1)
    return jnp.transpose(x, (0, 3, 1, 2))


if __name__ == "__main__":
    chs = (8, 8, 4)
    dropout = (True, False)
    N, H, W = 2, 8, 8

    key = jax.random.PRNGKey(0)
    k_x, k_f0, k_f1, k_p = jax.random.split(key, 4)

    x = jax.random.normal(k_x, (N, chs[0], H, W), jnp.float32)
    encoder_features = [
        jax.random.normal(k_f0, (N, chs[1], 2 * H, 2 * W), jnp.float32),
        jax.random.normal(k_f1, (N, chs[2], 4 * H, 4 * W), jnp.float32),
    ]
    params = init_decoder_params(k_p, chs, dropout)

    out = decoder_forward(x, encoder_features, params)
    out = jax.block_until_ready(out)
    assert out.shape == (N, 2 * chs[-1], 4 * H, 4 * W), out.shape

    # Self-check against an independent f32 reference (bf16 MXU inputs => loose tol).
    ref = _ref_decoder(x, encoder_features, params)
    assert bool(jnp.allclose(out, ref, rtol=0.1, atol=0.05)), "mismatch vs reference"

    print("KERNEL_OK")
</pallas_src>

<mosaic_0001>
module attributes {stable_mosaic.version = 11 : i64} {
  func.func @_fused_matmul_bn_relu_kernel(%arg0: i32, %arg1: i32, %arg2: memref<1x128x32xbf16, #tpu.memory_space<vmem>>, %arg3: memref<1x32x8xbf16, #tpu.memory_space<vmem>>, %arg4: memref<1x8xf32, #tpu.memory_space<vmem>>, %arg5: memref<1x128x8xf32, #tpu.memory_space<vmem>>) attributes {dimension_semantics = [#tpu.dimension_semantics<parallel>, #tpu.dimension_semantics<parallel>], iteration_bounds = array<i64: 4, 1>, scalar_prefetch = 0 : i64, scratch_operands = 0 : i64, tpu.core_type = #tpu.core_type<tc>, window_params = [{transform_indices = @transform_0, window_bounds = array<i64: 1, 128, 32>}, {transform_indices = @transform_1, window_bounds = array<i64: 1, 32, 8>}, {pipeline_mode = #tpu.pipeline_mode<synchronous>, transform_indices = @transform_2, window_bounds = array<i64: 1, 8>}, {transform_indices = @transform_3, window_bounds = array<i64: 1, 128, 8>}]} {
    %c0 = arith.constant 0 : index
    %c0_0 = arith.constant 0 : index
    %c0_1 = arith.constant 0 : index
    %0 = vector.load %arg2[%c0, %c0_0, %c0_1] : memref<1x128x32xbf16, #tpu.memory_space<vmem>>, vector<1x128x32xbf16>
    %1 = vector.shape_cast %0 : vector<1x128x32xbf16> to vector<128x32xbf16>
    %c0_2 = arith.constant 0 : index
    %c0_3 = arith.constant 0 : index
    %c0_4 = arith.constant 0 : index
    %2 = vector.load %arg3[%c0_2, %c0_3, %c0_4] : memref<1x32x8xbf16, #tpu.memory_space<vmem>>, vector<1x32x8xbf16>
    %3 = vector.shape_cast %2 : vector<1x32x8xbf16> to vector<32x8xbf16>
    %cst = arith.constant dense<0.000000e+00> : vector<128x8xf32>
    %4 = tpu.matmul %1, %3, %cst {dimension_numbers = #tpu.dot_dimension_numbers<[1], [0], [0], [1], [0, 0, 1, 1], [], []>} : vector<128x32xbf16>, vector<32x8xbf16>, vector<128x8xf32> -> vector<128x8xf32>
    %c0_5 = arith.constant 0 : index
    %c0_6 = arith.constant 0 : index
    %5 = vector.load %arg4[%c0_5, %c0_6] : memref<1x8xf32, #tpu.memory_space<vmem>>, vector<1x8xf32>
    %6 = vector.broadcast %5 : vector<1x8xf32> to vector<128x8xf32>
    %7 = arith.addf %4, %6 : vector<128x8xf32>
    %cst_7 = arith.constant 0.000000e+00 : f32
    %8 = vector.broadcast %cst_7 : f32 to vector<128x8xf32>
    %9 = arith.maximumf %7, %8 : vector<128x8xf32>
    %c0_8 = arith.constant 0 : index
    %c0_9 = arith.constant 0 : index
    %c0_10 = arith.constant 0 : index
    %10 = vector.load %arg5[%c0_8, %c0_9, %c0_10] : memref<1x128x8xf32, #tpu.memory_space<vmem>>, vector<1x128x8xf32>
    %11 = vector.shape_cast %10 : vector<1x128x8xf32> to vector<128x8xf32>
    %12 = vector.shape_cast %9 : vector<128x8xf32> to vector<1x128x8xf32>
    tpu.vector_store %arg5[%c0_8, %c0_9, %c0_10], %12 {strides = array<i32>} : memref<1x128x8xf32, #tpu.memory_space<vmem>>, vector<1x128x8xf32>,
    return
  }
  func.func @transform_0(%arg0: i32, %arg1: i32) -> (i32, i32, i32) {
    %c0_i32 = arith.constant 0 : i32
    %c0_i32_0 = arith.constant 0 : i32
    return %arg0, %arg1, %c0_i32 : i32, i32, i32
  }
  func.func @transform_1(%arg0: i32, %arg1: i32) -> (i32, i32, i32) {
    %c0_i32 = arith.constant 0 : i32
    %c0_i32_0 = arith.constant 0 : i32
    %c0_i32_1 = arith.constant 0 : i32
    return %arg0, %c0_i32, %c0_i32_0 : i32, i32, i32
  }
  func.func @transform_2(%arg0: i32, %arg1: i32) -> (i32, i32) {
    %c0_i32 = arith.constant 0 : i32
    %c0_i32_0 = arith.constant 0 : i32
    %c0_i32_1 = arith.constant 0 : i32
    return %c0_i32, %c0_i32_0 : i32, i32
  }
  func.func @transform_3(%arg0: i32, %arg1: i32) -> (i32, i32, i32) {
    %c0_i32 = arith.constant 0 : i32
    %c0_i32_0 = arith.constant 0 : i32
    return %arg0, %arg1, %c0_i32 : i32, i32, i32
  }
}

module attributes {stable_mosaic.version = 11 : i64} {
  func.func @_fused_matmul_bn_relu_kernel(%arg0: i32, %arg1: i32, %arg2: memref<1x512x64xbf16, #tpu.memory_space<vmem>>, %arg3: memref<1x64x4xbf16, #tpu.memory_space<vmem>>, %arg4: memref<1x4xf32, #tpu.memory_space<vmem>>, %arg5: memref<1x512x4xf32, #tpu.memory_space<vmem>>) attributes {dimension_semantics = [#tpu.dimension_semantics<parallel>, #tpu.dimension_semantics<parallel>], iteration_bounds = array<i64: 4, 1>, scalar_prefetch = 0 : i64, scratch_operands = 0 : i64, tpu.core_type = #tpu.core_type<tc>, window_params = [{transform_indices = @transform_0, window_bounds = array<i64: 1, 512, 64>}, {transform_indices = @transform_1, window_bounds = array<i64: 1, 64, 4>}, {pipeline_mode = #tpu.pipeline_mode<synchronous>, transform_indices = @transform_2, window_bounds = array<i64: 1, 4>}, {transform_indices = @transform_3, window_bounds = array<i64: 1, 512, 4>}]} {
    %c0 = arith.constant 0 : index
    %c0_0 = arith.constant 0 : index
    %c0_1 = arith.constant 0 : index
    %0 = vector.load %arg2[%c0, %c0_0, %c0_1] : memref<1x512x64xbf16, #tpu.memory_space<vmem>>, vector<1x512x64xbf16>
    %1 = vector.shape_cast %0 : vector<1x512x64xbf16> to vector<512x64xbf16>
    %c0_2 = arith.constant 0 : index
    %c0_3 = arith.constant 0 : index
    %c0_4 = arith.constant 0 : index
    %2 = vector.load %arg3[%c0_2, %c0_3, %c0_4] : memref<1x64x4xbf16, #tpu.memory_space<vmem>>, vector<1x64x4xbf16>
    %3 = vector.shape_cast %2 : vector<1x64x4xbf16> to vector<64x4xbf16>
    %cst = arith.constant dense<0.000000e+00> : vector<512x4xf32>
    %4 = tpu.matmul %1, %3, %cst {dimension_numbers = #tpu.dot_dimension_numbers<[1], [0], [0], [1], [0, 0, 1, 1], [], []>} : vector<512x64xbf16>, vector<64x4xbf16>, vector<512x4xf32> -> vector<512x4xf32>
    %c0_5 = arith.constant 0 : index
    %c0_6 = arith.constant 0 : index
    %5 = vector.load %arg4[%c0_5, %c0_6] : memref<1x4xf32, #tpu.memory_space<vmem>>, vector<1x4xf32>
    %6 = vector.broadcast %5 : vector<1x4xf32> to vector<512x4xf32>
    %7 = arith.addf %4, %6 : vector<512x4xf32>
    %cst_7 = arith.constant 0.000000e+00 : f32
    %8 = vector.broadcast %cst_7 : f32 to vector<512x4xf32>
    %9 = arith.maximumf %7, %8 : vector<512x4xf32>
    %c0_8 = arith.constant 0 : index
    %c0_9 = arith.constant 0 : index
    %c0_10 = arith.constant 0 : index
    %10 = vector.load %arg5[%c0_8, %c0_9, %c0_10] : memref<1x512x4xf32, #tpu.memory_space<vmem>>, vector<1x512x4xf32>
    %11 = vector.shape_cast %10 : vector<1x512x4xf32> to vector<512x4xf32>
    %12 = vector.shape_cast %9 : vector<512x4xf32> to vector<1x512x4xf32>
    tpu.vector_store %arg5[%c0_8, %c0_9, %c0_10], %12 {strides = array<i32>} : memref<1x512x4xf32, #tpu.memory_space<vmem>>, vector<1x512x4xf32>,
    return
  }
  func.func @transform_0(%arg0: i32, %arg1: i32) -> (i32, i32, i32) {
    %c0_i32 = arith.constant 0 : i32
    %c0_i32_0 = arith.constant 0 : i32
    return %arg0, %arg1, %c0_i32 : i32, i32, i32
  }
  func.func @transform_1(%arg0: i32, %arg1: i32) -> (i32, i32, i32) {
    %c0_i32 = arith.constant 0 : i32
    %c0_i32_0 = arith.constant 0 : i32
    %c0_i32_1 = arith.constant 0 : i32
    return %arg0, %c0_i32, %c0_i32_0 : i32, i32, i32
  }
  func.func @transform_2(%arg0: i32, %arg1: i32) -> (i32, i32) {
    %c0_i32 = arith.constant 0 : i32
    %c0_i32_0 = arith.constant 0 : i32
    %c0_i32_1 = arith.constant 0 : i32
    return %c0_i32, %c0_i32_0 : i32, i32
  }
  func.func @transform_3(%arg0: i32, %arg1: i32) -> (i32, i32, i32) {
    %c0_i32 = arith.constant 0 : i32
    %c0_i32_0 = arith.constant 0 : i32
    return %arg0, %arg1, %c0_i32 : i32, i32, i32
  }
}

</mosaic_0001>

<bundles_post_ra>
// kernel: decoder_forward.2
= control target key start
LH: loop header
LB: loop body
LE: loop exit
PB: predicated region body
PF: predicated region fallthrough
CT: control target
= control target key end

     0   :  { %s711_s12 = smov 0   ;;  %s713_s13 = smov 0   ;;  %s797_s0 = inlined_call_operand.vmem [shape: bf16[4,128,32], index: 0, kind: input, shape index: {}]   ;;  %s798_s1 = inlined_call_operand.vmem [shape: bf16[4,32,8], index: 1, kind: input, shape index: {}]   ;;  %s799_s2 = inlined_call_operand.vmem [shape: f32[1,8], index: 2, kind: input, shape index: {}]   ;;  %s800_s3 = inlined_call_operand.vmem [shape: f32[4,128,8], index: 3, kind: output, shape index: {}]  }
   0x1   :  { %s715_s14 = smov 0  }
   0x2 LB: > { %s25_s15 = sadd.s32 1, %s685_s13  ;;  %p568_p0 = scmp.ge.s32.totalorder %s689_s14, 1  ;;  %s689_s14 = sphi %s715_s14, %s13_s14   ;;  %s685_s13 = sphi %s713_s13, %s802_s13   ;;  %s681_s12 = sphi %s711_s12, %s801_s12  }
   0x3   : > { %p27_p1 = scmp.ge.s32.totalorder %s25_s15, 4  ;;  %p168_p2 = scmp.lt.s32.totalorder %s689_s14, 5 }
   0x5   : > { %s804_s15 = smov (%p27_p1, %s25_s15), 0  ;;  %p169_p3 = pnand %p568_p0, %p168_p2 }
   0x6   : > { %p206_p4 = scmp.lt.s32.totalorder (!%p169_p3), %s681_s12, 3  ;;  %vm310_vm0 = vcmask (!%p169_p3), 261120   ;;  %v575_v10 = vld [vmem:[%s799_s2] ss:$0 sm:$0xff] (!%p169_p3)  ;;  %vm448_vm1 = vcmask (!%p169_p3), 64512  }
   0x7   : > { %172 = sbr.rel (%p169_p3) target bundleno = 254 (0xfe), region = 32 }
   0xe   : > { %s806_s12 = smov (!%p206_p4, %s681_s12), 3 }
   0xf   : > { %s596_s16 = sshll.u32 %s806_s12, 6  ;;  %s597_s17 = sshll.u32 %s806_s12, 4 }
  0x10   : > { %s213_s20 = scalar_lea.vmem %s797_s0, %s596_s16  ;;  %s219_s23 = scalar_lea.vmem %s798_s1, %s597_s17 }
  0x11   : > { %v657_v0 = vld [vmem:[%s219_s23] sm:$0xff]   ;;  %v658_v1 = vld [vmem:[%s219_s23 + $0x8] sm:$0xff]   ;;  %v663_v6 = vld [vmem:[%s213_s20 + $0x10] sm:$0xff]   ;;  %s598_s26 = sshll.u32 %s806_s12, 7 }
  0x12   : > { %609 = vmatprep.subr.bf16.mxu0 %v657_v0  ;;  %629 = vmatprep.subr.bf16.mxu1 %v657_v0  ;;  %v659_v2 = vld [vmem:[%s213_s20] sm:$0xff]   ;;  %v661_v4 = vld [vmem:[%s213_s20 + $0x8] sm:$0xff]   ;;  %v664_v7 = vld [vmem:[%s213_s20 + $0x30] sm:$0xff]   ;;  %s754_s29 = scalar_lea.vmem %s800_s3, %s598_s26 }
  0x13   : > { %610 = vmatpush3.bf16.msra.mxu0 %v657_v0  ;;  %631 = vmatpush3.bf16.msra.mxu1 %v657_v0  ;;  %v660_v3 = vld [vmem:[%s213_s20 + $0x20] sm:$0xff]   ;;  %v662_v5 = vld [vmem:[%s213_s20 + $0x28] sm:$0xff]   ;;  %v665_v8 = vld [vmem:[%s213_s20 + $0x18] sm:$0xff]  }
  0x14   : > { %611 = vmatprep.subr.bf16.mxu0 %v658_v1  ;;  %630 = vmatprep.subr.bf16.mxu1 %v658_v1  ;;  %v666_v9 = vld [vmem:[%s213_s20 + $0x38] sm:$0xff]  }
  0x15   : > { %613 = vmatprep.mubr.msk.bf16.mxu0 %vm310_vm0, %v659_v2  ;;  %621 = vmatprep.mubr.msk.bf16.mxu1 %vm310_vm0, %v660_v3 }
  0x17   : > { %612 = vmatpush3.bf16.msra.mxu0 %v658_v1  ;;  %632 = vmatpush3.bf16.msra.mxu1 %v658_v1 }
  0x1a   : > { %614 = vmatmul.mubr.msk.bf16.vlgmr.msra.gmra.mrb[0].mxu0 %vm310_vm0, %v661_v4  ;;  %622 = vmatmul.mubr.msk.bf16.vlgmr.msra.gmra.mrb[0].mxu1 %vm310_vm0, %v662_v5 }
  0x1b   : > { %617 = vmatprep.mubr.msk.bf16.mxu0 %vm310_vm0, %v663_v6  ;;  %625 = vmatprep.mubr.msk.bf16.mxu1 %vm310_vm0, %v664_v7 }
  0x22   : > { %618 = vmatmul.mubr.msk.bf16.gmra.mrb[4].mxu0 %vm310_vm0, %v665_v8  ;;  %626 = vmatmul.mubr.msk.bf16.gmra.mrb[4].mxu1 %vm310_vm0, %v666_v9 }
  0xed   : > { %v615_v11 = vpop.f32.mrb[0].mxu0  ;;  %v623_v12 = vpop.f32.mrb[0].mxu1 }
  0xee   : > { %v378_v13 = vadd.f32 %v615_v11, %v575_v10  ;;  %v410_v14 = vadd.f32 %v623_v12, %v575_v10  ;;  %v369_v15 = vpop.f32.mrb[1].mxu0  ;;  %v401_v16 = vpop.f32.mrb[1].mxu1 }
  0xef   : > { %v370_v17 = vadd.f32 %v575_v10, %v369_v15  ;;  %v402_v18 = vadd.f32 %v575_v10, %v401_v16  ;;  %v616_v19 = vpop.f32.mrb[2].mxu0  ;;  %v624_v20 = vpop.f32.mrb[2].mxu1 }
  0xf0   : > { %v434_v21 = vmax.f32 %v378_v13, 0.0  ;;  %v442_v22 = vmax.f32 %v410_v14, 0.0  ;;  %v381_v23 = vadd.f32 %v616_v19, %v575_v10  ;;  %v413_v24 = vadd.f32 %v624_v20, %v575_v10  ;;  %v372_v25 = vpop.f32.mrb[3].mxu0  ;;  %v404_v26 = vpop.f32.mrb[3].mxu1 }
  0xf1   : > { %v432_v27 = vmax.f32 %v370_v17, 0.0  ;;  %v440_v28 = vmax.f32 %v402_v18, 0.0  ;;  %v373_v29 = vadd.f32 %v575_v10, %v372_v25  ;;  %v405_v30 = vadd.f32 %v575_v10, %v404_v26 }
  0xf2   : > { %451 = vst.msk [vmem:[%s754_s29 + $0x10] sm:$0xff] %vm448_vm1, %v434_v21  ;;  %459 = vst.msk [vmem:[%s754_s29 + $0x50] sm:$0xff] %vm448_vm1, %v442_v22  ;;  %v435_v31 = vmax.f32 %v381_v23, 0.0  ;;  %v443_v32 = vmax.f32 %v413_v24, 0.0 }
  0xf3   : > { %449 = vst.msk [vmem:[%s754_s29] sm:$0xff] %vm448_vm1, %v432_v27  ;;  %457 = vst.msk [vmem:[%s754_s29 + $0x40] sm:$0xff] %vm448_vm1, %v440_v28  ;;  %v433_v33 = vmax.f32 %v373_v29, 0.0  ;;  %v441_v34 = vmax.f32 %v405_v30, 0.0 }
  0xf4   : > { %452 = vst.msk [vmem:[%s754_s29 + $0x18] sm:$0xff] %vm448_vm1, %v435_v31  ;;  %460 = vst.msk [vmem:[%s754_s29 + $0x58] sm:$0xff] %vm448_vm1, %v443_v32 }
  0xf5   : > { %450 = vst.msk [vmem:[%s754_s29 + $0x8] sm:$0xff] %vm448_vm1, %v433_v33  ;;  %458 = vst.msk [vmem:[%s754_s29 + $0x48] sm:$0xff] %vm448_vm1, %v441_v34  ;;  %v619_v35 = vpop.f32.mrb[4].mxu0  ;;  %v627_v36 = vpop.f32.mrb[4].mxu1 }
  0xf6   : > { %v394_v37 = vadd.f32 %v619_v35, %v575_v10  ;;  %v426_v38 = vadd.f32 %v627_v36, %v575_v10  ;;  %v385_v39 = vpop.f32.mrb[5].mxu0  ;;  %v417_v40 = vpop.f32.mrb[5].mxu1 }
  0xf7   : > { %v386_v41 = vadd.f32 %v575_v10, %v385_v39  ;;  %v418_v42 = vadd.f32 %v575_v10, %v417_v40  ;;  %v620_v43 = vpop.f32.mrb[6].mxu0  ;;  %v628_v44 = vpop.f32.mrb[6].mxu1 }
  0xf8   : > { %v438_v45 = vmax.f32 %v394_v37, 0.0  ;;  %v446_v46 = vmax.f32 %v426_v38, 0.0  ;;  %v397_v47 = vadd.f32 %v620_v43, %v575_v10  ;;  %v429_v48 = vadd.f32 %v628_v44, %v575_v10  ;;  %v388_v49 = vpop.f32.mrb[7].mxu0  ;;  %v420_v50 = vpop.f32.mrb[7].mxu1 }
  0xf9   : > { %v436_v51 = vmax.f32 %v386_v41, 0.0  ;;  %v444_v52 = vmax.f32 %v418_v42, 0.0  ;;  %v389_v53 = vadd.f32 %v575_v10, %v388_v49  ;;  %v421_v54 = vadd.f32 %v575_v10, %v420_v50 }
  0xfa   : > { %455 = vst.msk [vmem:[%s754_s29 + $0x30] sm:$0xff] %vm448_vm1, %v438_v45  ;;  %463 = vst.msk [vmem:[%s754_s29 + $0x70] sm:$0xff] %vm448_vm1, %v446_v46  ;;  %v439_v55 = vmax.f32 %v397_v47, 0.0  ;;  %v447_v56 = vmax.f32 %v429_v48, 0.0 }
  0xfb   : > { %453 = vst.msk [vmem:[%s754_s29 + $0x20] sm:$0xff] %vm448_vm1, %v436_v51  ;;  %461 = vst.msk [vmem:[%s754_s29 + $0x60] sm:$0xff] %vm448_vm1, %v444_v52  ;;  %v437_v57 = vmax.f32 %v389_v53, 0.0  ;;  %v445_v58 = vmax.f32 %v421_v54, 0.0 }
  0xfc   : > { %456 = vst.msk [vmem:[%s754_s29 + $0x38] sm:$0xff] %vm448_vm1, %v439_v55  ;;  %464 = vst.msk [vmem:[%s754_s29 + $0x78] sm:$0xff] %vm448_vm1, %v447_v56 }
  0xfd   : > { %454 = vst.msk [vmem:[%s754_s29 + $0x28] sm:$0xff] %vm448_vm1, %v437_v57  ;;  %462 = vst.msk [vmem:[%s754_s29 + $0x68] sm:$0xff] %vm448_vm1, %v445_v58 }
  0xfe PF: > { %s13_s14 = sadd.s32 1, %s689_s14   ;;  %s801_s12 = smov %s685_s13 }
  0xff   : > { %p10_p5 = scmp.ge.s32.totalorder %s13_s14, 6   ;;  %s802_s13 = smov %s804_s15 }
 0x101   :  { %12 = sbr.rel (!%p10_p5) target bundleno = 2 (0x2), region = 65 }

// kernel: decoder_forward.3
= control target key start
LH: loop header
LB: loop body
LE: loop exit
PB: predicated region body
PF: predicated region fallthrough
CT: control target
= control target key end

     0   :  { %s1413_s12 = smov 0   ;;  %s1415_s13 = smov 0   ;;  %s1719_s0 = inlined_call_operand.vmem [shape: bf16[4,512,64], index: 0, kind: input, shape index: {}]   ;;  %s1720_s1 = inlined_call_operand.vmem [shape: bf16[4,64,4], index: 1, kind: input, shape index: {}]   ;;  %s1721_s2 = inlined_call_operand.vmem [shape: f32[1,4], index: 2, kind: input, shape index: {}]   ;;  %s1722_s3 = inlined_call_operand.vmem [shape: f32[4,512,4], index: 3, kind: output, shape index: {}]  }
   0x1   :  { %s1417_s14 = smov 0  }
   0x2 LB: > { %s25_s15 = sadd.s32 1, %s1387_s13  ;;  %p1112_p0 = scmp.ge.s32.totalorder %s1391_s14, 1  ;;  %s1391_s14 = sphi %s1417_s14, %s13_s14   ;;  %s1387_s13 = sphi %s1415_s13, %s1724_s13   ;;  %s1383_s12 = sphi %s1413_s12, %s1723_s12  }
   0x3   : > { %p27_p1 = scmp.ge.s32.totalorder %s25_s15, 4  ;;  %p168_p2 = scmp.lt.s32.totalorder %s1391_s14, 5 }
   0x5   : > { %s1726_s15 = smov (%p27_p1, %s25_s15), 0  ;;  %p169_p3 = pnand %p1112_p0, %p168_p2 }
   0x6   : > { %p206_p4 = scmp.lt.s32.totalorder (!%p169_p3), %s1383_s12, 3  ;;  %vm494_vm0 = vcmask (!%p169_p3), 523264   ;;  %v1510_v36 = vld [vmem:[%s1721_s2] ss:$0 sm:$0xff] (!%p169_p3)  ;;  %vm944_vm1 = vcmask (!%p169_p3), 31744  }
   0x7   : > { %172 = sbr.rel (%p169_p3) target bundleno = 310 (0x136), region = 32 }
   0xe   : > { %s1728_s12 = smov (!%p206_p4, %s1383_s12), 3 }
   0xf   : > { %s1190_s16 = sshll.u32 %s1728_s12, 8  ;;  %s1191_s17 = sshll.u32 %s1728_s12, 5 }
  0x10   : > { %s219_s20 = scalar_lea.vmem %s1720_s1, %s1191_s17  ;;  %s1441_s23 = scalar_lea.vmem %s1719_s0, %s1190_s16 }
  0x11   : > { %v1333_v0 = vld [vmem:[%s219_s20] sm:$0xff]   ;;  %v1334_v1 = vld [vmem:[%s219_s20 + $0x8] sm:$0xff]   ;;  %v1335_v2 = vld [vmem:[%s219_s20 + $0x10] sm:$0xff]   ;;  %s1192_s26 = sshll.u32 %s1728_s12, 9 }
  0x12   : > { %1229 = vmatprep.subr.bf16.mxu0 %v1333_v0  ;;  %1301 = vmatprep.subr.bf16.mxu1 %v1333_v0  ;;  %v1337_v3 = vld [vmem:[%s1441_s23] sm:$0xff]   ;;  %v1336_v5 = vld [vmem:[%s219_s20 + $0x18] sm:$0xff]   ;;  %v1339_v6 = vld [vmem:[%s1441_s23 + $0x8] sm:$0xff]   ;;  %s1518_s29 = scalar_lea.vmem %s1722_s3, %s1192_s26 }
  0x13   : > { %1230 = vmatpush3.bf16.msra.mxu0 %v1333_v0  ;;  %1305 = vmatpush3.bf16.msra.mxu1 %v1333_v0  ;;  %v1338_v4 = vld [vmem:[%s1441_s23 + $0x80] sm:$0xff]   ;;  %v1340_v7 = vld [vmem:[%s1441_s23 + $0x88] sm:$0xff]   ;;  %v1341_v8 = vld [vmem:[%s1441_s23 + $0x10] sm:$0xff]  }
  0x14   : > { %1231 = vmatprep.subr.bf16.mxu0 %v1334_v1  ;;  %1302 = vmatprep.subr.bf16.mxu1 %v1334_v1  ;;  %v1342_v9 = vld [vmem:[%s1441_s23 + $0x90] sm:$0xff]   ;;  %v1343_v10 = vld [vmem:[%s1441_s23 + $0x18] sm:$0xff]   ;;  %v1345_v12 = vld [vmem:[%s1441_s23 + $0x20] sm:$0xff]  }
  0x15   : > { %1237 = vmatprep.mubr.msk.bf16.mxu0 %vm494_vm0, %v1337_v3  ;;  %1269 = vmatprep.mubr.msk.bf16.mxu1 %vm494_vm0, %v1338_v4  ;;  %v1344_v11 = vld [vmem:[%s1441_s23 + $0x98] sm:$0xff]   ;;  %v1346_v13 = vld [vmem:[%s1441_s23 + $0xa0] sm:$0xff]   ;;  %v1347_v14 = vld [vmem:[%s1441_s23 + $0x28] sm:$0xff]  }
  0x16   : > { %v1348_v15 = vld [vmem:[%s1441_s23 + $0xa8] sm:$0xff]   ;;  %v1349_v16 = vld [vmem:[%s1441_s23 + $0x30] sm:$0xff]   ;;  %v1351_v18 = vld [vmem:[%s1441_s23 + $0x38] sm:$0xff]  }
  0x17   : > { %1232 = vmatpush3.bf16.msra.mxu0 %v1334_v1  ;;  %1306 = vmatpush3.bf16.msra.mxu1 %v1334_v1  ;;  %v1350_v17 = vld [vmem:[%s1441_s23 + $0xb0] sm:$0xff]   ;;  %v1352_v19 = vld [vmem:[%s1441_s23 + $0xb8] sm:$0xff]   ;;  %v1353_v20 = vld [vmem:[%s1441_s23 + $0x40] sm:$0xff]  }
  0x18   : > { %1233 = vmatprep.subr.bf16.mxu0 %v1335_v2  ;;  %1303 = vmatprep.subr.bf16.mxu1 %v1335_v2  ;;  %v1354_v21 = vld [vmem:[%s1441_s23 + $0xc0] sm:$0xff]   ;;  %v1355_v22 = vld [vmem:[%s1441_s23 + $0x48] sm:$0xff]   ;;  %v1357_v24 = vld [vmem:[%s1441_s23 + $0x50] sm:$0xff]  }
  0x19   : > { %v1356_v23 = vld [vmem:[%s1441_s23 + $0xc8] sm:$0xff]   ;;  %v1358_v25 = vld [vmem:[%s1441_s23 + $0xd0] sm:$0xff]   ;;  %v1359_v26 = vld [vmem:[%s1441_s23 + $0x58] sm:$0xff]  }
  0x1a   : > { %v1360_v27 = vld [vmem:[%s1441_s23 + $0xd8] sm:$0xff]   ;;  %v1361_v28 = vld [vmem:[%s1441_s23 + $0x60] sm:$0xff]   ;;  %v1363_v30 = vld [vmem:[%s1441_s23 + $0x68] sm:$0xff]  }
  0x1b   : > { %1234 = vmatpush3.bf16.msra.mxu0 %v1335_v2  ;;  %1307 = vmatpush3.bf16.msra.mxu1 %v1335_v2  ;;  %v1362_v29 = vld [vmem:[%s1441_s23 + $0xe0] sm:$0xff]   ;;  %v1364_v31 = vld [vmem:[%s1441_s23 + $0xe8] sm:$0xff]   ;;  %v1365_v32 = vld [vmem:[%s1441_s23 + $0x70] sm:$0xff]  }
  0x1c   : > { %1235 = vmatprep.subr.bf16.mxu0 %v1336_v5  ;;  %1304 = vmatprep.subr.bf16.mxu1 %v1336_v5  ;;  %v1366_v33 = vld [vmem:[%s1441_s23 + $0xf0] sm:$0xff]   ;;  %v1367_v34 = vld [vmem:[%s1441_s23 + $0x78] sm:$0xff]  }
  0x1d   : > { %v1368_v35 = vld [vmem:[%s1441_s23 + $0xf8] sm:$0xff]  }
  0x1f   : > { %1236 = vmatpush3.bf16.msra.mxu0 %v1336_v5  ;;  %1308 = vmatpush3.bf16.msra.mxu1 %v1336_v5 }
  0x22   : > { %1238 = vmatmul.mubr.msk.bf16.vlgmr.msra.gmra.mrb[0].mxu0 %vm494_vm0, %v1339_v6  ;;  %1270 = vmatmul.mubr.msk.bf16.vlgmr.msra.gmra.mrb[0].mxu1 %vm494_vm0, %v1340_v7 }
  0x23   : > { %1241 = vmatprep.mubr.msk.bf16.mxu0 %vm494_vm0, %v1341_v8  ;;  %1273 = vmatprep.mubr.msk.bf16.mxu1 %vm494_vm0, %v1342_v9 }
  0x2a   : > { %1242 = vmatmul.mubr.msk.bf16.gmra.mrb[4].mxu0 %vm494_vm0, %v1343_v10  ;;  %1274 = vmatmul.mubr.msk.bf16.gmra.mrb[4].mxu1 %vm494_vm0, %v1344_v11 }
  0x2b   : > { %1245 = vmatprep.mubr.msk.bf16.mxu0 %vm494_vm0, %v1345_v12  ;;  %1277 = vmatprep.mubr.msk.bf16.mxu1 %vm494_vm0, %v1346_v13 }
  0x32   : > { %1246 = vmatmul.mubr.msk.bf16.gmra.mrb[8].mxu0 %vm494_vm0, %v1347_v14  ;;  %1278 = vmatmul.mubr.msk.bf16.gmra.mrb[8].mxu1 %vm494_vm0, %v1348_v15 }
  0x33   : > { %1249 = vmatprep.mubr.msk.bf16.mxu0 %vm494_vm0, %v1349_v16  ;;  %1281 = vmatprep.mubr.msk.bf16.mxu1 %vm494_vm0, %v1350_v17 }
  0x3a   : > { %1250 = vmatmul.mubr.msk.bf16.gmra.mrb[12].mxu0 %vm494_vm0, %v1351_v18  ;;  %1282 = vmatmul.mubr.msk.bf16.gmra.mrb[12].mxu1 %vm494_vm0, %v1352_v19 }
  0x3b   : > { %1253 = vmatprep.mubr.msk.bf16.mxu0 %vm494_vm0, %v1353_v20  ;;  %1285 = vmatprep.mubr.msk.bf16.mxu1 %vm494_vm0, %v1354_v21 }
  0x42   : > { %1254 = vmatmul.mubr.msk.bf16.gmra.mrb[16].mxu0 %vm494_vm0, %v1355_v22  ;;  %1286 = vmatmul.mubr.msk.bf16.gmra.mrb[16].mxu1 %vm494_vm0, %v1356_v23 }
  0x43   : > { %1257 = vmatprep.mubr.msk.bf16.mxu0 %vm494_vm0, %v1357_v24  ;;  %1289 = vmatprep.mubr.msk.bf16.mxu1 %vm494_vm0, %v1358_v25 }
  0x4a   : > { %1258 = vmatmul.mubr.msk.bf16.gmra.mrb[20].mxu0 %vm494_vm0, %v1359_v26  ;;  %1290 = vmatmul.mubr.msk.bf16.gmra.mrb[20].mxu1 %vm494_vm0, %v1360_v27 }
  0x4b   : > { %1261 = vmatprep.mubr.msk.bf16.mxu0 %vm494_vm0, %v1361_v28  ;;  %1293 = vmatprep.mubr.msk.bf16.mxu1 %vm494_vm0, %v1362_v29 }
  0x52   : > { %1262 = vmatmul.mubr.msk.bf16.gmra.mrb[24].mxu0 %vm494_vm0, %v1363_v30  ;;  %1294 = vmatmul.mubr.msk.bf16.gmra.mrb[24].mxu1 %vm494_vm0, %v1364_v31 }
  0x53   : > { %1265 = vmatprep.mubr.msk.bf16.mxu0 %vm494_vm0, %v1365_v32  ;;  %1297 = vmatprep.mubr.msk.bf16.mxu1 %vm494_vm0, %v1366_v33 }
  0x5a   : > { %1266 = vmatmul.mubr.msk.bf16.gmra.mrb[28].mxu0 %vm494_vm0, %v1367_v34  ;;  %1298 = vmatmul.mubr.msk.bf16.gmra.mrb[28].mxu1 %vm494_vm0, %v1368_v35 }
  0xf5   : > { %v1239_v37 = vpop.f32.mrb[0].mxu0  ;;  %v1271_v38 = vpop.f32.mrb[0].mxu1 }
  0xf6   : > { %v634_v39 = vadd.f32 %v1239_v37, %v1510_v36  ;;  %v762_v40 = vadd.f32 %v1271_v38, %v1510_v36  ;;  %v625_v41 = vpop.f32.mrb[1].mxu0  ;;  %v753_v42 = vpop.f32.mrb[1].mxu1 }
  0xf7   : > { %v626_v43 = vadd.f32 %v1510_v36, %v625_v41  ;;  %v754_v44 = vadd.f32 %v1510_v36, %v753_v42  ;;  %v1240_v45 = vpop.f32.mrb[2].mxu0  ;;  %v1272_v46 = vpop.f32.mrb[2].mxu1 }
  0xf8   : > { %v882_v47 = vmax.f32 %v634_v39, 0.0  ;;  %v914_v48 = vmax.f32 %v762_v40, 0.0  ;;  %v637_v49 = vadd.f32 %v1240_v45, %v1510_v36  ;;  %v765_v50 = vadd.f32 %v1272_v46, %v1510_v36  ;;  %v628_v51 = vpop.f32.mrb[3].mxu0  ;;  %v756_v52 = vpop.f32.mrb[3].mxu1 }
  0xf9   : > { %v880_v53 = vmax.f32 %v626_v43, 0.0  ;;  %v912_v54 = vmax.f32 %v754_v44, 0.0  ;;  %v629_v55 = vadd.f32 %v1510_v36, %v628_v51  ;;  %v757_v56 = vadd.f32 %v1510_v36, %v756_v52 }
  0xfa   : > { %947 = vst.msk [vmem:[%s1518_s29 + $0x10] sm:$0xff] %vm944_vm1, %v882_v47  ;;  %979 = vst.msk [vmem:[%s1518_s29 + $0x110] sm:$0xff] %vm944_vm1, %v914_v48  ;;  %v883_v57 = vmax.f32 %v637_v49, 0.0  ;;  %v915_v58 = vmax.f32 %v765_v50, 0.0 }
  0xfb   : > { %945 = vst.msk [vmem:[%s1518_s29] sm:$0xff] %vm944_vm1, %v880_v53  ;;  %977 = vst.msk [vmem:[%s1518_s29 + $0x100] sm:$0xff] %vm944_vm1, %v912_v54  ;;  %v881_v59 = vmax.f32 %v629_v55, 0.0  ;;  %v913_v60 = vmax.f32 %v757_v56, 0.0 }
  0xfc   : > { %948 = vst.msk [vmem:[%s1518_s29 + $0x18] sm:$0xff] %vm944_vm1, %v883_v57  ;;  %980 = vst.msk [vmem:[%s1518_s29 + $0x118] sm:$0xff] %vm944_vm1, %v915_v58 }
  0xfd   : > { %946 = vst.msk [vmem:[%s1518_s29 + $0x8] sm:$0xff] %vm944_vm1, %v881_v59  ;;  %978 = vst.msk [vmem:[%s1518_s29 + $0x108] sm:$0xff] %vm944_vm1, %v913_v60  ;;  %v1243_v61 = vpop.f32.mrb[4].mxu0  ;;  %v1275_v62 = vpop.f32.mrb[4].mxu1 }
  0xfe   : > { %v650_v63 = vadd.f32 %v1243_v61, %v1510_v36  ;;  %v778_v0 = vadd.f32 %v1275_v62, %v1510_v36  ;;  %v641_v1 = vpop.f32.mrb[5].mxu0  ;;  %v769_v2 = vpop.f32.mrb[5].mxu1 }
  0xff   : > { %v642_v3 = vadd.f32 %v1510_v36, %v641_v1  ;;  %v770_v4 = vadd.f32 %v1510_v36, %v769_v2  ;;  %v1244_v5 = vpop.f32.mrb[6].mxu0  ;;  %v1276_v6 = vpop.f32.mrb[6].mxu1 }
 0x100   : > { %v886_v7 = vmax.f32 %v650_v63, 0.0  ;;  %v918_v8 = vmax.f32 %v778_v0, 0.0  ;;  %v653_v9 = vadd.f32 %v1244_v5, %v1510_v36  ;;  %v781_v10 = vadd.f32 %v1276_v6, %v1510_v36  ;;  %v644_v11 = vpop.f32.mrb[7].mxu0  ;;  %v772_v12 = vpop.f32.mrb[7].mxu1 }
 0x101   : > { %v884_v13 = vmax.f32 %v642_v3, 0.0  ;;  %v916_v14 = vmax.f32 %v770_v4, 0.0  ;;  %v645_v15 = vadd.f32 %v1510_v36, %v644_v11  ;;  %v773_v16 = vadd.f32 %v1510_v36, %v772_v12 }
 0x102   : > { %951 = vst.msk [vmem:[%s1518_s29 + $0x30] sm:$0xff] %vm944_vm1, %v886_v7  ;;  %983 = vst.msk [vmem:[%s1518_s29 + $0x130] sm:$0xff] %vm944_vm1, %v918_v8  ;;  %v887_v17 = vmax.f32 %v653_v9, 0.0  ;;  %v919_v18 = vmax.f32 %v781_v10, 0.0 }
 0x103   : > { %949 = vst.msk [vmem:[%s1518_s29 + $0x20] sm:$0xff] %vm944_vm1, %v884_v13  ;;  %981 = vst.msk [vmem:[%s1518_s29 + $0x120] sm:$0xff] %vm944_vm1, %v916_v14  ;;  %v885_v19 = vmax.f32 %v645_v15, 0.0  ;;  %v917_v20 = vmax.f32 %v773_v16, 0.0 }
 0x104   : > { %952 = vst.msk [vmem:[%s1518_s29 + $0x38] sm:$0xff] %vm944_vm1, %v887_v17  ;;  %984 = vst.msk [vmem:[%s1518_s29 + $0x138] sm:$0xff] %vm944_vm1, %v919_v18 }
 0x105   : > { %950 = vst.msk [vmem:[%s1518_s29 + $0x28] sm:$0xff] %vm944_vm1, %v885_v19  ;;  %982 = vst.msk [vmem:[%s1518_s29 + $0x128] sm:$0xff] %vm944_vm1, %v917_v20  ;;  %v1247_v21 = vpop.f32.mrb[8].mxu0  ;;  %v1279_v22 = vpop.f32.mrb[8].mxu1 }
 0x106   : > { %v666_v23 = vadd.f32 %v1247_v21, %v1510_v36  ;;  %v794_v24 = vadd.f32 %v1279_v22, %v1510_v36  ;;  %v657_v25 = vpop.f32.mrb[9].mxu0  ;;  %v785_v26 = vpop.f32.mrb[9].mxu1 }
 0x107   : > { %v658_v27 = vadd.f32 %v1510_v36, %v657_v25  ;;  %v786_v28 = vadd.f32 %v1510_v36, %v785_v26  ;;  %v1248_v29 = vpop.f32.mrb[10].mxu0  ;;  %v1280_v30 = vpop.f32.mrb[10].mxu1 }
 0x108   : > { %v890_v31 = vmax.f32 %v666_v23, 0.0  ;;  %v922_v32 = vmax.f32 %v794_v24, 0.0  ;;  %v669_v33 = vadd.f32 %v1248_v29, %v1510_v36  ;;  %v797_v34 = vadd.f32 %v1280_v30, %v1510_v36  ;;  %v660_v35 = vpop.f32.mrb[11].mxu0  ;;  %v788_v37 = vpop.f32.mrb[11].mxu1 }
 0x109   : > { %v888_v38 = vmax.f32 %v658_v27, 0.0  ;;  %v920_v39 = vmax.f32 %v786_v28, 0.0  ;;  %v661_v40 = vadd.f32 %v1510_v36, %v660_v35  ;;  %v789_v41 = vadd.f32 %v1510_v36, %v788_v37 }
 0x10a   : > { %955 = vst.msk [vmem:[%s1518_s29 + $0x50] sm:$0xff] %vm944_vm1, %v890_v31  ;;  %987 = vst.msk [vmem:[%s1518_s29 + $0x150] sm:$0xff] %vm944_vm1, %v922_v32  ;;  %v891_v42 = vmax.f32 %v669_v33, 0.0  ;;  %v923_v43 = vmax.f32 %v797_v34, 0.0 }
 0x10b   : > { %953 = vst.msk [vmem:[%s1518_s29 + $0x40] sm:$0xff] %vm944_vm1, %v888_v38  ;;  %985 = vst.msk [vmem:[%s1518_s29 + $0x140] sm:$0xff] %vm944_vm1, %v920_v39  ;;  %v889_v44 = vmax.f32 %v661_v40, 0.0  ;;  %v921_v45 = vmax.f32 %v789_v41, 0.0 }
 0x10c   : > { %956 = vst.msk [vmem:[%s1518_s29 + $0x58] sm:$0xff] %vm944_vm1, %v891_v42  ;;  %988 = vst.msk [vmem:[%s1518_s29 + $0x158] sm:$0xff] %vm944_vm1, %v923_v43 }
 0x10d   : > { %954 = vst.msk [vmem:[%s1518_s29 + $0x48] sm:$0xff] %vm944_vm1, %v889_v44  ;;  %986 = vst.msk [vmem:[%s1518_s29 + $0x148] sm:$0xff] %vm944_vm1, %v921_v45  ;;  %v1251_v46 = vpop.f32.mrb[12].mxu0  ;;  %v1283_v47 = vpop.f32.mrb[12].mxu1 }
 0x10e   : > { %v682_v48 = vadd.f32 %v1251_v46, %v1510_v36  ;;  %v810_v49 = vadd.f32 %v1283_v47, %v1510_v36  ;;  %v673_v50 = vpop.f32.mrb[13].mxu0  ;;  %v801_v51 = vpop.f32.mrb[13].mxu1 }
 0x10f   : > { %v674_v52 = vadd.f32 %v1510_v36, %v673_v50  ;;  %v802_v53 = vadd.f32 %v1510_v36, %v801_v51  ;;  %v1252_v54 = vpop.f32.mrb[14].mxu0  ;;  %v1284_v55 = vpop.f32.mrb[14].mxu1 }
 0x110   : > { %v894_v56 = vmax.f32 %v682_v48, 0.0  ;;  %v926_v57 = vmax.f32 %v810_v49, 0.0  ;;  %v685_v58 = vadd.f32 %v1252_v54, %v1510_v36  ;;  %v813_v59 = vadd.f32 %v1284_v55, %v1510_v36  ;;  %v676_v60 = vpop.f32.mrb[15].mxu0  ;;  %v804_v61 = vpop.f32.mrb[15].mxu1 }
 0x111   : > { %v892_v62 = vmax.f32 %v674_v52, 0.0  ;;  %v924_v63 = vmax.f32 %v802_v53, 0.0  ;;  %v677_v0 = vadd.f32 %v1510_v36, %v676_v60  ;;  %v805_v1 = vadd.f32 %v1510_v36, %v804_v61 }
 0x112   : > { %959 = vst.msk [vmem:[%s1518_s29 + $0x70] sm:$0xff] %vm944_vm1, %v894_v56  ;;  %991 = vst.msk [vmem:[%s1518_s29 + $0x170] sm:$0xff] %vm944_vm1, %v926_v57  ;;  %v895_v2 = vmax.f32 %v685_v58, 0.0  ;;  %v927_v3 = vmax.f32 %v813_v59, 0.0 }
 0x113   : > { %957 = vst.msk [vmem:[%s1518_s29 + $0x60] sm:$0xff] %vm944_vm1, %v892_v62  ;;  %989 = vst.msk [vmem:[%s1518_s29 + $0x160] sm:$0xff] %vm944_vm1, %v924_v63  ;;  %v893_v4 = vmax.f32 %v677_v0, 0.0  ;;  %v925_v5 = vmax.f32 %v805_v1, 0.0 }
 0x114   : > { %960 = vst.msk [vmem:[%s1518_s29 + $0x78] sm:$0xff] %vm944_vm1, %v895_v2  ;;  %992 = vst.msk [vmem:[%s1518_s29 + $0x178] sm:$0xff] %vm944_vm1, %v927_v3 }
 0x115   : > { %958 = vst.msk [vmem:[%s1518_s29 + $0x68] sm:$0xff] %vm944_vm1, %v893_v4  ;;  %990 = vst.msk [vmem:[%s1518_s29 + $0x168] sm:$0xff] %vm944_vm1, %v925_v5  ;;  %v1255_v6 = vpop.f32.mrb[16].mxu0  ;;  %v1287_v7 = vpop.f32.mrb[16].mxu1 }
 0x116   : > { %v698_v8 = vadd.f32 %v1255_v6, %v1510_v36  ;;  %v826_v9 = vadd.f32 %v1287_v7, %v1510_v36  ;;  %v689_v10 = vpop.f32.mrb[17].mxu0  ;;  %v817_v11 = vpop.f32.mrb[17].mxu1 }
 0x117   : > { %v690_v12 = vadd.f32 %v1510_v36, %v689_v10  ;;  %v818_v13 = vadd.f32 %v1510_v36, %v817_v11  ;;  %v1256_v14 = vpop.f32.mrb[18].mxu0  ;;  %v1288_v15 = vpop.f32.mrb[18].mxu1 }
 0x118   : > { %v898_v16 = vmax.f32 %v698_v8, 0.0  ;;  %v930_v17 = vmax.f32 %v826_v9, 0.0  ;;  %v701_v18 = vadd.f32 %v1256_v14, %v1510_v36  ;;  %v829_v19 = vadd.f32 %v1288_v15, %v1510_v36  ;;  %v692_v20 = vpop.f32.mrb[19].mxu0  ;;  %v820_v21 = vpop.f32.mrb[19].mxu1 }
 0x119   : > { %v896_v22 = vmax.f32 %v690_v12, 0.0  ;;  %v928_v23 = vmax.f32 %v818_v13, 0.0  ;;  %v693_v24 = vadd.f32 %v1510_v36, %v692_v20  ;;  %v821_v25 = vadd.f32 %v1510_v36, %v820_v21 }
 0x11a   : > { %963 = vst.msk [vmem:[%s1518_s29 + $0x90] sm:$0xff] %vm944_vm1, %v898_v16  ;;  %995 = vst.msk [vmem:[%s1518_s29 + $0x190] sm:$0xff] %vm944_vm1, %v930_v17  ;;  %v899_v26 = vmax.f32 %v701_v18, 0.0  ;;  %v931_v27 = vmax.f32 %v829_v19, 0.0 }
 0x11b   : > { %961 = vst.msk [vmem:[%s1518_s29 + $0x80] sm:$0xff] %vm944_vm1, %v896_v22  ;;  %993 = vst.msk [vmem:[%s1518_s29 + $0x180] sm:$0xff] %vm944_vm1, %v928_v23  ;;  %v897_v28 = vmax.f32 %v693_v24, 0.0  ;;  %v929_v29 = vmax.f32 %v821_v25, 0.0 }
 0x11c   : > { %964 = vst.msk [vmem:[%s1518_s29 + $0x98] sm:$0xff] %vm944_vm1, %v899_v26  ;;  %996 = vst.msk [vmem:[%s1518_s29 + $0x198] sm:$0xff] %vm944_vm1, %v931_v27 }
 0x11d   : > { %962 = vst.msk [vmem:[%s1518_s29 + $0x88] sm:$0xff] %vm944_vm1, %v897_v28  ;;  %994 = vst.msk [vmem:[%s1518_s29 + $0x188] sm:$0xff] %vm944_vm1, %v929_v29  ;;  %v1259_v30 = vpop.f32.mrb[20].mxu0  ;;  %v1291_v31 = vpop.f32.mrb[20].mxu1 }
 0x11e   : > { %v714_v32 = vadd.f32 %v1259_v30, %v1510_v36  ;;  %v842_v33 = vadd.f32 %v1291_v31, %v1510_v36  ;;  %v705_v34 = vpop.f32.mrb[21].mxu0  ;;  %v833_v35 = vpop.f32.mrb[21].mxu1 }
 0x11f   : > { %v706_v37 = vadd.f32 %v1510_v36, %v705_v34  ;;  %v834_v38 = vadd.f32 %v1510_v36, %v833_v35  ;;  %v1260_v39 = vpop.f32.mrb[22].mxu0  ;;  %v1292_v40 = vpop.f32.mrb[22].mxu1 }
 0x120   : > { %v902_v41 = vmax.f32 %v714_v32, 0.0  ;;  %v934_v42 = vmax.f32 %v842_v33, 0.0  ;;  %v717_v43 = vadd.f32 %v1260_v39, %v1510_v36  ;;  %v845_v44 = vadd.f32 %v1292_v40, %v1510_v36  ;;  %v708_v45 = vpop.f32.mrb[23].mxu0  ;;  %v836_v46 = vpop.f32.mrb[23].mxu1 }
 0x121   : > { %v900_v47 = vmax.f32 %v706_v37, 0.0  ;;  %v932_v48 = vmax.f32 %v834_v38, 0.0  ;;  %v709_v49 = vadd.f32 %v1510_v36, %v708_v45  ;;  %v837_v50 = vadd.f32 %v1510_v36, %v836_v46 }
 0x122   : > { %967 = vst.msk [vmem:[%s1518_s29 + $0xb0] sm:$0xff] %vm944_vm1, %v902_v41  ;;  %999 = vst.msk [vmem:[%s1518_s29 + $0x1b0] sm:$0xff] %vm944_vm1, %v934_v42  ;;  %v903_v51 = vmax.f32 %v717_v43, 0.0  ;;  %v935_v52 = vmax.f32 %v845_v44, 0.0 }
 0x123   : > { %965 = vst.msk [vmem:[%s1518_s29 + $0xa0] sm:$0xff] %vm944_vm1, %v900_v47  ;;  %997 = vst.msk [vmem:[%s1518_s29 + $0x1a0] sm:$0xff] %vm944_vm1, %v932_v48  ;;  %v901_v53 = vmax.f32 %v709_v49, 0.0  ;;  %v933_v54 = vmax.f32 %v837_v50, 0.0 }
 0x124   : > { %968 = vst.msk [vmem:[%s1518_s29 + $0xb8] sm:$0xff] %vm944_vm1, %v903_v51  ;;  %1000 = vst.msk [vmem:[%s1518_s29 + $0x1b8] sm:$0xff] %vm944_vm1, %v935_v52 }
 0x125   : > { %966 = vst.msk [vmem:[%s1518_s29 + $0xa8] sm:$0xff] %vm944_vm1, %v901_v53  ;;  %998 = vst.msk [vmem:[%s1518_s29 + $0x1a8] sm:$0xff] %vm944_vm1, %v933_v54  ;;  %v1263_v55 = vpop.f32.mrb[24].mxu0  ;;  %v1295_v56 = vpop.f32.mrb[24].mxu1 }
 0x126   : > { %v730_v57 = vadd.f32 %v1263_v55, %v1510_v36  ;;  %v858_v58 = vadd.f32 %v1295_v56, %v1510_v36  ;;  %v721_v59 = vpop.f32.mrb[25].mxu0  ;;  %v849_v60 = vpop.f32.mrb[25].mxu1 }
 0x127   : > { %v722_v61 = vadd.f32 %v1510_v36, %v721_v59  ;;  %v850_v62 = vadd.f32 %v1510_v36, %v849_v60  ;;  %v1264_v63 = vpop.f32.mrb[26].mxu0  ;;  %v1296_v0 = vpop.f32.mrb[26].mxu1 }
 0x128   : > { %v906_v1 = vmax.f32 %v730_v57, 0.0  ;;  %v938_v2 = vmax.f32 %v858_v58, 0.0  ;;  %v733_v3 = vadd.f32 %v1264_v63, %v1510_v36  ;;  %v861_v4 = vadd.f32 %v1296_v0, %v1510_v36  ;;  %v724_v5 = vpop.f32.mrb[27].mxu0  ;;  %v852_v6 = vpop.f32.mrb[27].mxu1 }
 0x129   : > { %v904_v7 = vmax.f32 %v722_v61, 0.0  ;;  %v936_v8 = vmax.f32 %v850_v62, 0.0  ;;  %v725_v9 = vadd.f32 %v1510_v36, %v724_v5  ;;  %v853_v10 = vadd.f32 %v1510_v36, %v852_v6 }
 0x12a   : > { %971 = vst.msk [vmem:[%s1518_s29 + $0xd0] sm:$0xff] %vm944_vm1, %v906_v1  ;;  %1003 = vst.msk [vmem:[%s1518_s29 + $0x1d0] sm:$0xff] %vm944_vm1, %v938_v2  ;;  %v907_v11 = vmax.f32 %v733_v3, 0.0  ;;  %v939_v12 = vmax.f32 %v861_v4, 0.0 }
 0x12b   : > { %969 = vst.msk [vmem:[%s1518_s29 + $0xc0] sm:$0xff] %vm944_vm1, %v904_v7  ;;  %1001 = vst.msk [vmem:[%s1518_s29 + $0x1c0] sm:$0xff] %vm944_vm1, %v936_v8  ;;  %v905_v13 = vmax.f32 %v725_v9, 0.0  ;;  %v937_v14 = vmax.f32 %v853_v10, 0.0 }
 0x12c   : > { %972 = vst.msk [vmem:[%s1518_s29 + $0xd8] sm:$0xff] %vm944_vm1, %v907_v11  ;;  %1004 = vst.msk [vmem:[%s1518_s29 + $0x1d8] sm:$0xff] %vm944_vm1, %v939_v12 }
 0x12d   : > { %970 = vst.msk [vmem:[%s1518_s29 + $0xc8] sm:$0xff] %vm944_vm1, %v905_v13  ;;  %1002 = vst.msk [vmem:[%s1518_s29 + $0x1c8] sm:$0xff] %vm944_vm1, %v937_v14  ;;  %v1267_v15 = vpop.f32.mrb[28].mxu0  ;;  %v1299_v16 = vpop.f32.mrb[28].mxu1 }
 0x12e   : > { %v746_v17 = vadd.f32 %v1267_v15, %v1510_v36  ;;  %v874_v18 = vadd.f32 %v1299_v16, %v1510_v36  ;;  %v737_v19 = vpop.f32.mrb[29].mxu0  ;;  %v865_v20 = vpop.f32.mrb[29].mxu1 }
 0x12f   : > { %v738_v21 = vadd.f32 %v1510_v36, %v737_v19  ;;  %v866_v22 = vadd.f32 %v1510_v36, %v865_v20  ;;  %v1268_v23 = vpop.f32.mrb[30].mxu0  ;;  %v1300_v24 = vpop.f32.mrb[30].mxu1 }
 0x130   : > { %v910_v25 = vmax.f32 %v746_v17, 0.0  ;;  %v942_v26 = vmax.f32 %v874_v18, 0.0  ;;  %v749_v27 = vadd.f32 %v1268_v23, %v1510_v36  ;;  %v877_v28 = vadd.f32 %v1300_v24, %v1510_v36  ;;  %v740_v29 = vpop.f32.mrb[31].mxu0  ;;  %v868_v30 = vpop.f32.mrb[31].mxu1 }
 0x131   : > { %v908_v31 = vmax.f32 %v738_v21, 0.0  ;;  %v940_v32 = vmax.f32 %v866_v22, 0.0  ;;  %v741_v33 = vadd.f32 %v1510_v36, %v740_v29  ;;  %v869_v34 = vadd.f32 %v1510_v36, %v868_v30 }
 0x132   : > { %975 = vst.msk [vmem:[%s1518_s29 + $0xf0] sm:$0xff] %vm944_vm1, %v910_v25  ;;  %1007 = vst.msk [vmem:[%s1518_s29 + $0x1f0] sm:$0xff] %vm944_vm1, %v942_v26  ;;  %v911_v35 = vmax.f32 %v749_v27, 0.0  ;;  %v943_v37 = vmax.f32 %v877_v28, 0.0 }
 0x133   : > { %973 = vst.msk [vmem:[%s1518_s29 + $0xe0] sm:$0xff] %vm944_vm1, %v908_v31  ;;  %1005 = vst.msk [vmem:[%s1518_s29 + $0x1e0] sm:$0xff] %vm944_vm1, %v940_v32  ;;  %v909_v38 = vmax.f32 %v741_v33, 0.0  ;;  %v941_v39 = vmax.f32 %v869_v34, 0.0 }
 0x134   : > { %976 = vst.msk [vmem:[%s1518_s29 + $0xf8] sm:$0xff] %vm944_vm1, %v911_v35  ;;  %1008 = vst.msk [vmem:[%s1518_s29 + $0x1f8] sm:$0xff] %vm944_vm1, %v943_v37 }
 0x135   : > { %974 = vst.msk [vmem:[%s1518_s29 + $0xe8] sm:$0xff] %vm944_vm1, %v909_v38  ;;  %1006 = vst.msk [vmem:[%s1518_s29 + $0x1e8] sm:$0xff] %vm944_vm1, %v941_v39 }
 0x136 PF: > { %s13_s14 = sadd.s32 1, %s1391_s14   ;;  %s1723_s12 = smov %s1387_s13 }
 0x137   : > { %p10_p5 = scmp.ge.s32.totalorder %s13_s14, 6   ;;  %s1724_s13 = smov %s1726_s15 }
 0x139   :  { %12 = sbr.rel (!%p10_p5) target bundleno = 2 (0x2), region = 65 }

</bundles_post_ra>
